<compile_context>
chip_gen: v5e
topology: v5e:2x2
jax: 0.10.0
libtpu: 0.0.40
codegen_flags: <defaults>
</compile_context>

<pallas_src>
import functools

import jax
import jax.numpy as jnp
from jax.experimental import pallas as pl
from jax.experimental.pallas import tpu as pltpu


def _round_up(x, m):
    return ((x + m - 1) // m) * m


# ----------------------------------------------------------------------------- kernels
def _conv1x1_bn_kernel(x_ref, w_ref, shift_ref, o_ref, *, compute_dtype):
    # x_ref:     (C_in, thw)   channel-major activation slab for one batch element
    # w_ref:     (C_out, C_in) BN-scale-folded weight (constant index_map -> resident)
    # shift_ref: (C_out, 1)    folded BN shift, f32
    # o_ref:     (C_out, thw)  lane-dense output slab
    x = x_ref[...]
    if compute_dtype is not None and x.dtype != compute_dtype:
        x = x.astype(compute_dtype)        # in-kernel cast: no extra HBM pass
    acc = jnp.dot(w_ref[...], x, preferred_element_type=jnp.float32)
    o_ref[...] = (acc + shift_ref[...]).astype(o_ref.dtype)


def _conv1x1_bn_kernel_acc(x_ref, w_ref, shift_ref, o_ref, acc_ref, *, compute_dtype):
    # Same as above, but C_in is split over the last ('arbitrary') grid axis and
    # accumulated in an f32 VMEM scratch (P3 init / finalize pattern).
    k = pl.program_id(2)

    @pl.when(k == 0)
    def _():
        acc_ref[...] = jnp.zeros_like(acc_ref)

    x = x_ref[...]
    if compute_dtype is not None and x.dtype != compute_dtype:
        x = x.astype(compute_dtype)
    acc_ref[...] += jnp.dot(w_ref[...], x, preferred_element_type=jnp.float32)

    @pl.when(k == pl.num_programs(2) - 1)
    def _():
        o_ref[...] = (acc_ref[...] + shift_ref[...]).astype(o_ref.dtype)


# ----------------------------------------------------------------------- tile selection
_VMEM_BUDGET = 28 << 20   # conservative per-step footprint target; fits v5e/v6e/v7x


def _choose_tiles(n, c_in, c_out, hw, x_bytes, w_bytes, o_bytes, tile_hw, tile_cin):
    """Pick (thw, tcin, use_acc, vmem_needed) from a VMEM budget."""
    # Weight + shift have constant index_maps (never re-DMA'd) but still get the
    # default 2 buffers; count both copies against the budget for robustness
    # (pl.Buffered(1) would free one copy, intentionally left at the default).
    resident = 2 * (c_out * c_in * w_bytes + c_out * 4)

    def step_cost(thw, tcin, use_acc):
        c = 2 * tcin * thw * x_bytes + 2 * c_out * thw * o_bytes   # double-buffered x / out
        if use_acc:
            c += c_out * thw * 4                                    # f32 accumulator scratch
        return c

    # --- contraction (C_in) tiling: only when forced, or when even the minimal lane
    #     tile with full C_in busts the budget (and C_in allows a 128-multiple divisor).
    tcin, use_acc = c_in, False
    if tile_cin is not None and tile_cin < c_in:
        if c_in % int(tile_cin) or int(tile_cin) % 128:
            raise ValueError("tile_cin must divide c_in and be a multiple of 128")
        tcin, use_acc = int(tile_cin), True
    elif resident + step_cost(128, c_in, False) > _VMEM_BUDGET and c_in % 128 == 0:
        while (tcin > 128 and (tcin // 2) % 128 == 0 and c_in % (tcin // 2) == 0
               and resident + step_cost(128, tcin, True) > _VMEM_BUDGET):
            tcin //= 2
        use_acc = tcin < c_in

    # --- lane (H*W) tile: largest 128-multiple within the budget (capped).
    cap = 2048 if tile_hw is None else max(128, (int(tile_hw) // 128) * 128)
    thw = max(128, min(_round_up(hw, 128), cap))
    while thw > 128 and resident + step_cost(thw, tcin, use_acc) > _VMEM_BUDGET:
        thw -= 128

    # --- guarantee >= 2 grid steps when N == 1 (v7x megacore + DMA/compute overlap).
    if n == 1 and hw > 128:
        thw = min(thw, _round_up(-(-hw // 2), 128))

    vmem_needed = resident + step_cost(thw, tcin, use_acc)
    return thw, tcin, use_acc, vmem_needed


# ----------------------------------------------------------------------------- wrapper
def conv1x1_bn(x_nchw, weight, gamma, beta, running_mean, running_var,
               eps=1e-5, tile_hw=None, tile_cin=None, compute_dtype=None):
    """1x1 conv (no bias) + eval-mode BatchNorm2d.  NCHW in / NCHW out.

    compute_dtype: matmul operand dtype (e.g. jnp.bfloat16 — recommended on v5e).
      The activation is cast *inside* the kernel; accumulation, the BN shift epilogue
      and the output dtype are unaffected.  None -> keep the input dtype (exact).
    tile_hw / tile_cin: optional manual tile overrides (None -> VMEM-budget auto).
    """
    n, c_in, h, w = x_nchw.shape
    c_out = weight.shape[0]
    hw = h * w

    # ---- Fold BN (eval mode): scale into the weight, per-channel shift separate.
    inv_std = 1.0 / jnp.sqrt(running_var.astype(jnp.float32) + eps)
    scale = gamma.astype(jnp.float32) * inv_std                               # (C_out,)
    shift = (beta.astype(jnp.float32)
             - running_mean.astype(jnp.float32) * scale).reshape(c_out, 1)    # (C_out, 1)
    w2d = weight.reshape(c_out, c_in).astype(jnp.float32) * scale[:, None]    # (C_out, C_in)

    cdt = x_nchw.dtype if compute_dtype is None else jnp.dtype(compute_dtype)
    w2d = w2d.astype(cdt)                           # small: cast in wrapper is fine
    kernel_cdt = None if cdt == x_nchw.dtype else cdt   # activation cast happens in-kernel

    # Channel-major view: free reshape, NO transpose / pad / astype of the activation.
    x3 = x_nchw.reshape(n, c_in, hw)

    thw, tcin, use_acc, vmem_needed = _choose_tiles(
        n, c_in, c_out, hw,
        jnp.dtype(x_nchw.dtype).itemsize, jnp.dtype(cdt).itemsize,
        jnp.dtype(x_nchw.dtype).itemsize, tile_hw, tile_cin)

    hw_tiles = -(-hw // thw)   # cdiv grid over the unpadded H*W; Pallas masks the edge block

    compiler_params = pltpu.CompilerParams(
        dimension_semantics=(("parallel", "parallel", "arbitrary") if use_acc
                             else ("parallel", "parallel")),
        vmem_limit_bytes=int(max(vmem_needed + (4 << 20), 32 << 20)),
    )

    if use_acc:
        grid = (n, hw_tiles, c_in // tcin)
        grid_spec = pltpu.PrefetchScalarGridSpec(
            num_scalar_prefetch=0,
            grid=grid,
            in_specs=[
                pl.BlockSpec((None, tcin, thw), lambda b, j, k: (b, k, j)),
                pl.BlockSpec((c_out, tcin), lambda b, j, k: (0, k)),
                pl.BlockSpec((c_out, 1), lambda b, j, k: (0, 0)),
            ],
            out_specs=pl.BlockSpec((None, c_out, thw), lambda b, j, k: (b, 0, j)),
            scratch_shapes=[pltpu.VMEM((c_out, thw), jnp.float32)],
        )
        kernel = functools.partial(_conv1x1_bn_kernel_acc, compute_dtype=kernel_cdt)
    else:
        grid = (n, hw_tiles)
        grid_spec = pltpu.PrefetchScalarGridSpec(
            num_scalar_prefetch=0,
            grid=grid,
            in_specs=[
                pl.BlockSpec((None, c_in, thw), lambda b, j: (b, 0, j)),
                pl.BlockSpec((c_out, c_in), lambda b, j: (0, 0)),
                pl.BlockSpec((c_out, 1), lambda b, j: (0, 0)),
            ],
            out_specs=pl.BlockSpec((None, c_out, thw), lambda b, j: (b, 0, j)),
        )
        kernel = functools.partial(_conv1x1_bn_kernel, compute_dtype=kernel_cdt)

    out3 = pl.pallas_call(
        kernel,
        out_shape=jax.ShapeDtypeStruct((n, c_out, hw), x_nchw.dtype),
        grid_spec=grid_spec,
        compiler_params=compiler_params,
    )(x3, w2d, shift)

    return out3.reshape(n, c_out, h, w)


# ----------------------------------------------------------------------- module wrapper
def init_adjust_all_layer_params(key, in_channels, out_channels):
    """Deterministic parameter init mirroring the PyTorch module's shapes."""
    params = []
    for c_in, c_out in zip(in_channels, out_channels):
        key, k_w, k_g, k_b, k_m, k_v = jax.random.split(key, 6)
        params.append(dict(
            weight=jax.random.normal(k_w, (c_out, c_in, 1, 1), jnp.float32) * 0.1,
            gamma=1.0 + 0.1 * jax.random.normal(k_g, (c_out,), jnp.float32),
            beta=0.1 * jax.random.normal(k_b, (c_out,), jnp.float32),
            running_mean=0.1 * jax.random.normal(k_m, (c_out,), jnp.float32),
            running_var=jnp.abs(1.0 + 0.1 * jax.random.normal(k_v, (c_out,), jnp.float32)),
        ))
    return params


def adjust_all_layer(features, params, eps=1e-5, tile_hw=None, compute_dtype=None):
    """Forward pass of AdjustAllLayer.

    Single branch -> one NCHW array in / one out; otherwise list in / list out.
    """
    def _branch(x, p):
        return conv1x1_bn(x, p["weight"], p["gamma"], p["beta"],
                          p["running_mean"], p["running_var"],
                          eps=eps, tile_hw=tile_hw, compute_dtype=compute_dtype)

    if len(params) == 1:
        return _branch(features, params[0])
    return [_branch(feat, p) for feat, p in zip(features, params)]


def _reference(features, params, eps=1e-5):
    """Pure-JAX reference (1x1 conv + eval BN) for correctness checks."""
    outs = []
    feats = features if isinstance(features, (list, tuple)) else [features]
    for x, p in zip(feats, params):
        c_out, c_in = p["weight"].shape[:2]
        w2d = p["weight"].reshape(c_out, c_in)
        y = jnp.einsum("nchw,oc->nohw", x, w2d, precision=jax.lax.Precision.HIGHEST)
        inv_std = 1.0 / jnp.sqrt(p["running_var"] + eps)
        scale = (p["gamma"] * inv_std).reshape(1, c_out, 1, 1)
        shift = (p["beta"] - p["running_mean"] * p["gamma"] * inv_std).reshape(1, c_out, 1, 1)
        outs.append(y * scale + shift)
    return outs if isinstance(features, (list, tuple)) else outs[0]


if __name__ == "__main__":
    key = jax.random.PRNGKey(0)
    in_channels = [4, 8]
    out_channels = [8, 16]

    key, k0, k1, k2, k3 = jax.random.split(key, 5)
    features = [
        jax.random.normal(k0, (2, 4, 16, 16), jnp.float32),   # branch 0: NCHW
        jax.random.normal(k1, (2, 8, 16, 16), jnp.float32),   # branch 1: NCHW
    ]
    params = init_adjust_all_layer_params(key, in_channels, out_channels)

    # Tolerances cover TPU MXU pass-decomposition differences between the Pallas dot
    # and the XLA reference; real bugs (missing BN scale/shift, wrong orientation)
    # produce errors >> these bounds.
    TOL_F32, TOL_BF16 = 2e-2, 6e-2

    # 1) f32 path.
    outs = adjust_all_layer(features, params)
    outs = [jax.block_until_ready(o) for o in outs]
    refs = _reference(features, params)
    for o, r in zip(outs, refs):
        assert o.shape == r.shape, (o.shape, r.shape)
        assert float(jnp.max(jnp.abs(o - r))) < TOL_F32

    # 2) bf16 compute path (activation cast in-kernel; scale-folded weight pre-cast).
    outs_bf16 = adjust_all_layer(features, params, compute_dtype=jnp.bfloat16)
    outs_bf16 = [jax.block_until_ready(o) for o in outs_bf16]
    for o, r in zip(outs_bf16, refs):
        assert o.shape == r.shape, (o.shape, r.shape)
        assert float(jnp.max(jnp.abs(o - r))) < TOL_BF16

    # 3) Ragged spatial size (HW = 400, not % 128): exercises the pad-free cdiv grid
    #    with a masked edge block, and the N==1 ">=2 grid steps" guarantee.
    x_odd = jax.random.normal(k2, (1, 4, 20, 20), jnp.float32)
    p0 = params[0]
    o_odd = conv1x1_bn(x_odd, p0["weight"], p0["gamma"], p0["beta"],
                       p0["running_mean"], p0["running_var"])
    o_odd = jax.block_until_ready(o_odd)
    r_odd = _reference(x_odd, [p0])
    assert o_odd.shape == r_odd.shape, (o_odd.shape, r_odd.shape)
    assert float(jnp.max(jnp.abs(o_odd - r_odd))) < TOL_F32

    # 4) C_in-split accumulator path (forced small tile_cin) + ragged HW (12*12 = 144).
    key, kw, kg, kb, km, kv = jax.random.split(key, 6)
    c_in4, c_out4 = 256, 64
    p4 = dict(
        weight=jax.random.normal(kw, (c_out4, c_in4, 1, 1), jnp.float32) * 0.05,
        gamma=1.0 + 0.1 * jax.random.normal(kg, (c_out4,), jnp.float32),
        beta=0.1 * jax.random.normal(kb, (c_out4,), jnp.float32),
        running_mean=0.1 * jax.random.normal(km, (c_out4,), jnp.float32),
        running_var=jnp.abs(1.0 + 0.1 * jax.random.normal(kv, (c_out4,), jnp.float32)),
    )
    x4 = jax.random.normal(k3, (1, c_in4, 12, 12), jnp.float32)
    o4 = conv1x1_bn(x4, p4["weight"], p4["gamma"], p4["beta"],
                    p4["running_mean"], p4["running_var"], tile_cin=128)
    o4 = jax.block_until_ready(o4)
    r4 = _reference(x4, [p4])
    assert o4.shape == r4.shape, (o4.shape, r4.shape)
    assert float(jnp.max(jnp.abs(o4 - r4))) < TOL_F32

    print("KERNEL_OK")
</pallas_src>

<mosaic_0001>
module attributes {stable_mosaic.version = 11 : i64} {
  func.func @_conv1x1_bn_kernel(%arg0: i32, %arg1: i32, %arg2: memref<1x4x256xf32, #tpu.memory_space<vmem>>, %arg3: memref<8x4xf32, #tpu.memory_space<vmem>>, %arg4: memref<8x1xf32, #tpu.memory_space<vmem>>, %arg5: memref<1x8x256xf32, #tpu.memory_space<vmem>>) attributes {dimension_semantics = [#tpu.dimension_semantics<parallel>, #tpu.dimension_semantics<parallel>], iteration_bounds = array<i64: 2, 1>, scalar_prefetch = 0 : i64, scratch_operands = 0 : i64, tpu.core_type = #tpu.core_type<tc>, window_params = [{transform_indices = @transform_0, window_bounds = array<i64: 1, 4, 256>}, {pipeline_mode = #tpu.pipeline_mode<synchronous>, transform_indices = @transform_1, window_bounds = array<i64: 8, 4>}, {pipeline_mode = #tpu.pipeline_mode<synchronous>, transform_indices = @transform_2, window_bounds = array<i64: 8, 1>}, {transform_indices = @transform_3, window_bounds = array<i64: 1, 8, 256>}]} {
    %c0 = arith.constant 0 : index
    %c0_0 = arith.constant 0 : index
    %c0_1 = arith.constant 0 : index
    %0 = vector.load %arg2[%c0, %c0_0, %c0_1] : memref<1x4x256xf32, #tpu.memory_space<vmem>>, vector<1x4x256xf32>
    %1 = vector.shape_cast %0 : vector<1x4x256xf32> to vector<4x256xf32>
    %c0_2 = arith.constant 0 : index
    %c0_3 = arith.constant 0 : index
    %2 = vector.load %arg3[%c0_2, %c0_3] : memref<8x4xf32, #tpu.memory_space<vmem>>, vector<8x4xf32>
    %cst = arith.constant dense<0.000000e+00> : vector<8x256xf32>
    %3 = tpu.matmul %2, %1, %cst {dimension_numbers = #tpu.dot_dimension_numbers<[1], [0], [0], [1], [0, 0, 1, 1], [], []>} : vector<8x4xf32>, vector<4x256xf32>, vector<8x256xf32> -> vector<8x256xf32>
    %c0_4 = arith.constant 0 : index
    %c0_5 = arith.constant 0 : index
    %4 = vector.load %arg4[%c0_4, %c0_5] : memref<8x1xf32, #tpu.memory_space<vmem>>, vector<8x1xf32>
    %5 = vector.broadcast %4 : vector<8x1xf32> to vector<8x256xf32>
    %6 = arith.addf %3, %5 : vector<8x256xf32>
    %c0_6 = arith.constant 0 : index
    %c0_7 = arith.constant 0 : index
    %c0_8 = arith.constant 0 : index
    %7 = vector.load %arg5[%c0_6, %c0_7, %c0_8] : memref<1x8x256xf32, #tpu.memory_space<vmem>>, vector<1x8x256xf32>
    %8 = vector.shape_cast %7 : vector<1x8x256xf32> to vector<8x256xf32>
    %9 = vector.shape_cast %6 : vector<8x256xf32> to vector<1x8x256xf32>
    tpu.vector_store %arg5[%c0_6, %c0_7, %c0_8], %9 {strides = array<i32>} : memref<1x8x256xf32, #tpu.memory_space<vmem>>, vector<1x8x256xf32>,
    return
  }
  func.func @transform_0(%arg0: i32, %arg1: i32) -> (i32, i32, i32) {
    %c0_i32 = arith.constant 0 : i32
    %c0_i32_0 = arith.constant 0 : i32
    return %arg0, %c0_i32, %arg1 : i32, i32, i32
  }
  func.func @transform_1(%arg0: i32, %arg1: i32) -> (i32, i32) {
    %c0_i32 = arith.constant 0 : i32
    %c0_i32_0 = arith.constant 0 : i32
    %c0_i32_1 = arith.constant 0 : i32
    return %c0_i32, %c0_i32_0 : i32, i32
  }
  func.func @transform_2(%arg0: i32, %arg1: i32) -> (i32, i32) {
    %c0_i32 = arith.constant 0 : i32
    %c0_i32_0 = arith.constant 0 : i32
    %c0_i32_1 = arith.constant 0 : i32
    return %c0_i32, %c0_i32_0 : i32, i32
  }
  func.func @transform_3(%arg0: i32, %arg1: i32) -> (i32, i32, i32) {
    %c0_i32 = arith.constant 0 : i32
    %c0_i32_0 = arith.constant 0 : i32
    return %arg0, %c0_i32, %arg1 : i32, i32, i32
  }
}

</mosaic_0001>

<bundles_post_ra>
// kernel: tpu_custom_call.1
= control target key start
LH: loop header
LB: loop body
LE: loop exit
PB: predicated region body
PF: predicated region fallthrough
CT: control target
= control target key end

     0   :  { %8 = vsyncpa [#allocation3], 0  ;;  %s638_s0 = inlined_call_operand.vmem [shape: f32[2,4,256], index: 0, kind: input, shape index: {}]   ;;  %s639_s1 = inlined_call_operand.vmem [shape: f32[8,4], index: 1, kind: input, shape index: {}]   ;;  %s640_s2 = inlined_call_operand.vmem [shape: f32[8,1], index: 2, kind: input, shape index: {}]   ;;  %s641_s3 = inlined_call_operand.hbm [shape: f32[2,8,256], index: 3, kind: output, shape index: {}]  }
   0x1   :  { %10 = vsyncpa [#allocation3 + $0x1], 0  ;;  %s535_s12 = smov 0   ;;  %s537_s13 = smov 0  }
   0x2   :  { %s539_s14 = smov 0   ;;  %s541_s15 = smov 0  }
   0x3   :  { %s543_s16 = smov 0   ;;  %s545_s17 = smov 0  }
   0x4 LB: > { %s358_s18 = sadd.s32 4294967295, %s512_s17   ;;  %s359_s19 = sadd.s32 4294967294, %s512_s17   ;;  %s512_s17 = sphi %s545_s17, %s16_s17   ;;  %s508_s16 = sphi %s543_s16, %s648_s16   ;;  %s504_s15 = sphi %s541_s15, %s647_s15   ;;  %s500_s14 = sphi %s539_s14, %s646_s14   ;;  %s496_s13 = sphi %s537_s13, %s645_s13   ;;  %s492_s12 = sphi %s535_s12, %s644_s12  }
   0x5   : > { %s28_s20 = sadd.s32 1, %s508_s16  ;;  %s107_s21 = sadd.s32 1, %s500_s14 }
   0x6   : > { %p30_p0 = scmp.ge.s32.totalorder %s28_s20, 2  ;;  %p117_p1 = scmp.ne.s32.totalorder %s500_s14, %s496_s13 }
   0x7   : > { %p118_p2 = scmp.eq.s32.totalorder %s358_s18, 1  ;;  %p123_p3 = scmp.ne.s32.totalorder %s496_s13, %s492_s12 }
   0x8   : > { %s650_s20 = smov (%p30_p0, %s28_s20), 0  ;;  %p124_p5 = scmp.eq.s32.totalorder %s359_s19, 1 }
   0x9   : > { %p575_p4 = por %p118_p2, %p117_p1  ;;  %s102_s23 = ssub.s32 %s508_s16, %s650_s20 }
   0xa   : > { %p362_p6 = scmp.ge.s32.totalorder %s512_s17, 1  ;;  %p105_p7 = scmp.eq.s32.totalorder %s102_s23, 0 }
   0xb   : > { %p582_p8 = por %p124_p5, %p123_p3  ;;  %p161_p9 = scmp.lt.s32.totalorder %s512_s17, 3 }
   0xc   : > { %s588_s25 = scalar_select %p105_p7, %s500_s14, %s107_s21  }
   0xd   : > { %p162_p10 = pnand %p362_p6, %p161_p9 }
   0xe   : > { %p190_p11 = scmp.lt.s32.totalorder (!%p162_p10), %s504_s15, 1  ;;  %s186_s8 = sand.u32 (!%p162_p10), 1, %s496_s13  }
   0xf   : > { %165 = sbr.rel (%p162_p10) target bundleno = 166 (0xa6), region = 32  ;;  %s363_s9 = sshll.u32 (!%p162_p10), %s186_s8, 4 }
  0x10   : > { %s376_s10 = sshll.u32 (!%p162_p10), %s504_s15, 4  ;;  %s188_s21 = scalar_lea.vmem (!%p162_p10), [#allocation2], %s363_s9 }
  0x11   : > { %s277_s19 = scalar_lea.hbm (!%p162_p10), %s641_s3, %s376_s10  ;;  %s279_s23 = sshll.u32 (!%p162_p10), %s188_s21, 4  ;;  %s280_s23 = int_to_ptr.vmem [resolvable:$true] %s279_s23 }
  0x12   : > { %s281_s26 = sshll.u32 (!%p162_p10), %s277_s19, 4  ;;  %s264_s27 = scalar_lea.sflag (!%p162_p10), [#allocation3], %s186_s8  ;;  %s282_s26 = int_to_ptr.hbm [resolvable:$true] %s281_s26 }
  0x13   : > { %s454_s4 = scalar_lea.hbm (!%p162_p10), %s641_s3, 32 }
  0x14   : > { %v202_v0 = vld [vmem:[%s640_s2] sm:$0xff]  ;;  %v514_v1 = vmov 0   ;;  %s191_s28 = scalar_select %p190_p11, %s504_s15, 1  ;;  %vm216_vm0 = vcmask 1043456   ;;  %vm212_vm1 = vcmask 31744  }
  0x15   : > { %433 = vset.pattern.permute.xlu0 %v514_v1  ;;  %v201_v3 = vld [vmem:[%s639_s1] sm:$0xff] }
  0x16   : > { %205 = vperm.xlu0 %433, %v202_v0   ;;  %s375_s29 = sshll.u32 %s191_s28, 3  ;;  %s448_s28 = sshra.s32 %s282_s26, 4  ;;  %s449_s28 = int_to_ptr.hbm [resolvable:$true] %s448_s28 }
  0x17   : > { %s197_s5 = scalar_lea.vmem %s638_s0, %s375_s29  ;;  %s450_s15 = scalar_lea.hbm %s449_s28, 16 }
  0x18   : > { %v200_v2 = vld [vmem:[%s197_s5] sm:$0xff]  ;;  %p451_p12 = scmp.ne.s32.totalorder %s449_s28, %s450_s15  ;;  %p455_p1 = scmp.lt.s32.totalorder %s449_s28, %s641_s3 }
  0x19   : > { %209 = vst [vmem:[#allocation1] ss:$2 sm:$0xff] %v200_v2  ;;  %p456_p2 = scmp.lt.s32.totalorder %s454_s4, %s450_s15 }
  0x1a   : > { %p452_p13 = pnand %p451_p12, %p575_p4 }
  0x1b   : > { %p457_p3 = por %p456_p2, %p455_p1 }
  0x1c   : > { %p453_p0 = pneg %p452_p13 }
  0x1e   : > { %p458_p5 = pnand %p457_p3, %p453_p0 }
  0x20   : > { %v210_v4 = vld.sshfl [vmem:[#allocation1] sm:$0xff pattern:$0x75316420]  ;;  %v211_v5 = vld.sshfl [vmem:[#allocation1 + $0x8] sm:$0xff pattern:$0x75316420] }
  0x21   : > { %366 = vmatpush.msk.msra.mxu0 %vm216_vm0, %v210_v4  ;;  %368 = vmatpush.msk.msra.mxu1 %vm216_vm0, %v211_v5 }
  0x22   : > { %367 = vmatmul.msk.f32.vlgmr.msra.gmra.mxu0 %vm212_vm1, %v201_v3  ;;  %369 = vmatmul.msk.f32.vlgmr.msra.gmra.mxu1 %vm212_vm1, %v201_v3 }
  0x88   : > { %v206_v6 = vpop.permute.xlu0 %205 }
  0x9f   : > { %v238_v7 = vpop.f32.mrf.mxu0  ;;  %v258_v8 = vpop.f32.mrf.mxu1 }
  0xa0   : > { %v239_v9 = vadd.f32 %v238_v7, %v206_v6  ;;  %v259_v10 = vadd.f32 %v258_v8, %v206_v6 }
  0xa2   : > { %261 = vst [vmem:[%s188_s21] sm:$0xff] %v239_v9 }
  0xa3   : > { %262 = vst [vmem:[%s188_s21 + $0x8] sm:$0xff] %v259_v10 }
  0xa4   : > { %461 = shalt.err (!%p458_p5)
}
  0xa5   : > { %377 = dma.vmem_to_hbm [thread:$0]  (%p575_p4), %s280_s23, 256, %s282_s26, %s264_s27  }
  0xa6 PF: > { %p383_p6 = scmp.ge.s32.totalorder %s512_s17, 2  ;;  %s293_s7 = sand.u32 1, %s492_s12  }
  0xa7   : > { %s294_s8 = scalar_lea.sflag [#allocation3], %s293_s7 }
  0xa8   : > { %p380_p7 = pnand %p383_p6, %p582_p8 }
  0xaa   : > { %p381_p9 = pneg %p380_p7 }
  0xac   : > { %487 = dma.done.wait (%p381_p9), %s294_s8, 256  }
  0xad   : > { %489 = vsyncadd (%p381_p9), %s294_s8, 4294967040  ;;  %s16_s17 = sadd.s32 1, %s512_s17   ;;  %s644_s12 = smov %s496_s13 }
  0xae   : > { %p13_p10 = scmp.ge.s32.totalorder %s16_s17, 4   ;;  %s645_s13 = smov %s500_s14 }
  0xaf   : > { %s646_s14 = smov %s588_s25  ;;  %s647_s15 = smov %s508_s16 }
  0xb0   : > { %s648_s16 = smov %s650_s20  ;;  %15 = sbr.rel (!%p13_p10) target bundleno = 4 (0x4), region = 67 }
  0xb5   :  { %300 = vsyncpa [#allocation3], 1 }
  0xb6   :  { %302 = vsyncpa [#allocation3 + $0x1], 1 }

</bundles_post_ra>
